<compile_context>
chip_gen: v7x
topology: tpu7x:2x2x1
jax: 0.10.0
libtpu: 0.0.40
codegen_flags: <defaults>
</compile_context>

<pallas_src>
import jax
import jax.numpy as jnp
from jax.experimental import pallas as pl
from jax.experimental.pallas import tpu as pltpu


def _round_up(a, m):
    return ((a + m - 1) // m) * m


# ---------------------------------------------------------------------------
# Tiny-shape path (IN <= 8, OUT < 128): pure VPU, no padding, single grid step.
# ---------------------------------------------------------------------------
def _tiny_linear_kernel(x_ref, w_ref, b_ref, o_ref):
    x = x_ref[...].astype(jnp.float32)        # (M, K)  K tiny, unrolled below
    w = w_ref[...].astype(jnp.float32)        # (K, N)
    acc = x[:, 0:1] * w[0:1, :]               # (M, N) via lane/sublane broadcasts
    for k in range(1, x.shape[1]):            # static unroll, K <= 8
        acc = acc + x[:, k:k + 1] * w[k:k + 1, :]
    o_ref[...] = (acc + b_ref[...].astype(jnp.float32)).astype(o_ref.dtype)


def _tiny_linear(x2d, w_t, b2d, out_dtype):
    M, IN = x2d.shape
    OUT = w_t.shape[1]
    return pl.pallas_call(
        _tiny_linear_kernel,
        out_shape=jax.ShapeDtypeStruct((M, OUT), out_dtype),
        grid_spec=pltpu.PrefetchScalarGridSpec(
            num_scalar_prefetch=0,
            grid=(1,),
            in_specs=[
                pl.BlockSpec((M, IN), lambda i: (0, 0)),
                pl.BlockSpec((IN, OUT), lambda i: (0, 0)),
                pl.BlockSpec((1, OUT), lambda i: (0, 0)),
            ],
            out_specs=pl.BlockSpec((M, OUT), lambda i: (0, 0)),
        ),
        compiler_params=pltpu.CompilerParams(
            dimension_semantics=("arbitrary",),
        ),
    )(x2d, w_t, b2d)


# ---------------------------------------------------------------------------
# General tiled MXU path.
# ---------------------------------------------------------------------------
def _linear_kernel_single_k(x_ref, w_ref, b_ref, o_ref):
    # Whole K fits in one tile: single MXU pass, no accumulator scratch.
    o_ref[...] = (
        jnp.dot(x_ref[...], w_ref[...], preferred_element_type=jnp.float32)
        + b_ref[...]
    ).astype(o_ref.dtype)


def _linear_kernel_multi_k(x_ref, w_ref, b_ref, o_ref):
    # f32 output resident across the k axis: accumulate directly into it.
    k = pl.program_id(2)

    @pl.when(k == 0)
    def _():
        o_ref[...] = jnp.broadcast_to(b_ref[...], o_ref.shape)

    o_ref[...] += jnp.dot(x_ref[...], w_ref[...],
                          preferred_element_type=jnp.float32)


def _linear_kernel_multi_k_acc(x_ref, w_ref, b_ref, o_ref, acc_ref):
    # Low-precision output: keep an f32 VMEM accumulator.
    k = pl.program_id(2)

    @pl.when(k == 0)
    def _():
        acc_ref[...] = jnp.broadcast_to(b_ref[...], acc_ref.shape)

    acc_ref[...] += jnp.dot(x_ref[...], w_ref[...],
                            preferred_element_type=jnp.float32)

    @pl.when(k == pl.num_programs(2) - 1)
    def _():
        o_ref[...] = acc_ref[...].astype(o_ref.dtype)


def linear_pallas(x, w_t, bias, *, tm=256, tn=512, tk=512,
                  use_bf16_inputs=False):
    """y = x @ w_t + bias.

    x: (..., IN), w_t: (IN, OUT) (weight already transposed), bias: (OUT,) / (1, OUT).
    """
    *lead, IN = x.shape
    OUT = w_t.shape[1]
    M = 1
    for d in lead:
        M *= d
    out_dtype = x.dtype

    x2d = x.reshape(M, IN)
    b2d = bias.reshape(1, OUT).astype(jnp.float32)

    # ---- tiny-shape fast path (what Linear(2, 2) actually hits) ----------
    if IN <= 8 and OUT <= 128 and M <= 4096:
        y2d = _tiny_linear(x2d, w_t, b2d, out_dtype)
        return y2d.reshape(*lead, OUT)

    # ---- general tiled MXU path ------------------------------------------
    if use_bf16_inputs:
        x2d = x2d.astype(jnp.bfloat16)
        w_t = w_t.astype(jnp.bfloat16)

    # Hardware-aligned adaptive tiles: sublane multiple (8) on M, lane
    # multiple (128) on K / N.
    tm = min(tm, _round_up(M, 8))
    tk = min(tk, _round_up(IN, 128))
    tn = min(tn, _round_up(OUT, 128))

    Mp = _round_up(M, tm)
    Kp = _round_up(IN, tk)
    Np = _round_up(OUT, tn)

    # Pad only when actually needed (zero K-padding is numerically exact).
    x_p = x2d if (Mp, Kp) == (M, IN) else (
        jnp.zeros((Mp, Kp), x2d.dtype).at[:M, :IN].set(x2d))
    w_p = w_t if (Kp, Np) == (IN, OUT) else (
        jnp.zeros((Kp, Np), w_t.dtype).at[:IN, :OUT].set(w_t))
    b_p = b2d if Np == OUT else (
        jnp.zeros((1, Np), jnp.float32).at[:, :OUT].set(b2d))

    nk = Kp // tk
    cost = pl.CostEstimate(
        flops=2 * Mp * Np * Kp,
        transcendentals=0,
        bytes_accessed=(x_p.dtype.itemsize * Mp * Kp
                        + w_p.dtype.itemsize * Kp * Np
                        + 4 * (Mp * Np + Np)),
    )

    if nk == 1:
        grid = (Mp // tm, Np // tn)
        in_specs = [
            pl.BlockSpec((tm, tk), lambda i, j: (i, 0)),
            pl.BlockSpec((tk, tn), lambda i, j: (0, j)),
            pl.BlockSpec((1, tn), lambda i, j: (0, j)),
        ]
        out_specs = pl.BlockSpec((tm, tn), lambda i, j: (i, j))
        kernel = _linear_kernel_single_k
        scratch = []
        dims = ("parallel", "parallel")
    else:
        grid = (Mp // tm, Np // tn, nk)
        in_specs = [
            pl.BlockSpec((tm, tk), lambda i, j, k: (i, k)),
            pl.BlockSpec((tk, tn), lambda i, j, k: (k, j)),
            pl.BlockSpec((1, tn), lambda i, j, k: (0, j)),
        ]
        out_specs = pl.BlockSpec((tm, tn), lambda i, j, k: (i, j))
        dims = ("parallel", "parallel", "arbitrary")
        if out_dtype == jnp.float32:
            kernel = _linear_kernel_multi_k
            scratch = []
        else:
            kernel = _linear_kernel_multi_k_acc
            scratch = [pltpu.VMEM((tm, tn), jnp.float32)]

    out_p = pl.pallas_call(
        kernel,
        out_shape=jax.ShapeDtypeStruct((Mp, Np), out_dtype),
        grid_spec=pltpu.PrefetchScalarGridSpec(
            num_scalar_prefetch=0,
            grid=grid,
            in_specs=in_specs,
            out_specs=out_specs,
            scratch_shapes=scratch,
        ),
        compiler_params=pltpu.CompilerParams(
            dimension_semantics=dims,
            vmem_limit_bytes=48 * 1024 * 1024,  # safe on v7x (64 MiB physical VMEM)
        ),
        cost_estimate=cost,
    )(x_p, w_p, b_p)

    out = out_p if (Mp, Np) == (M, OUT) else out_p[:M, :OUT]
    return out.reshape(*lead, OUT)


class Model:
    """JAX/Pallas port of the PyTorch Model (Linear(2, 2); permute unused; returns v1)."""

    IN_FEATURES = 2
    OUT_FEATURES = 2

    def __init__(self, key):
        in_f, out_f = self.IN_FEATURES, self.OUT_FEATURES
        kw, kb = jax.random.split(key)
        bound = in_f ** -0.5
        # Deterministic init mimicking torch.nn.Linear's uniform init.
        self.weight = jax.random.uniform(
            kw, (out_f, in_f), jnp.float32, minval=-bound, maxval=bound)
        self.bias = jax.random.uniform(
            kb, (out_f,), jnp.float32, minval=-bound, maxval=bound)
        # Static parameter transforms hoisted out of the per-call path.
        self.w_t = jnp.asarray(self.weight.T)          # (IN, OUT)
        self.bias2d = self.bias.reshape(1, out_f)      # (1, OUT)
        # jit: unused permute is DCE'd; reshapes fuse around the custom call.
        self._forward = jax.jit(self._forward_impl)

    def _forward_impl(self, x1):
        v1 = linear_pallas(x1, self.w_t, self.bias2d)
        v2 = jnp.transpose(v1, (0, 2, 1))  # dead code, as in the reference
        del v2
        return v1

    def __call__(self, x1):
        return self._forward(x1)


if __name__ == "__main__":
    key = jax.random.PRNGKey(0)
    k_model, k_x, k_x2, k_w2, k_b2 = jax.random.split(key, 5)

    # --- primary check: shapes implied by the module (Linear(2, 2), 3-D input) ---
    model = Model(k_model)
    B, S, IN = 2, 8, 2
    x1 = jax.random.normal(k_x, (B, S, IN), jnp.float32)

    out = jax.block_until_ready(model(x1))
    ref = x1 @ model.weight.T + model.bias
    assert out.shape == (B, S, 2)
    assert jnp.allclose(out, ref, atol=1e-5, rtol=1e-5)

    # --- secondary check: exercise the general tiled MXU path (multi-K grid) ---
    B2, S2, IN2, OUT2 = 2, 128, 640, 384
    x2 = jax.random.normal(k_x2, (B2, S2, IN2), jnp.float32)
    w2 = jax.random.normal(k_w2, (OUT2, IN2), jnp.float32) * 0.05
    b2 = jax.random.normal(k_b2, (OUT2,), jnp.float32)
    y2 = jax.block_until_ready(jax.jit(linear_pallas)(x2, w2.T, b2))
    ref2 = x2 @ w2.T + b2
    assert y2.shape == (B2, S2, OUT2)
    assert jnp.allclose(y2, ref2, atol=5e-2, rtol=2e-2)

    print("KERNEL_OK")
</pallas_src>

<mosaic_0001>
module attributes {stable_mosaic.version = 11 : i64} {
  func.func @_tiny_linear_kernel(%arg0: i32, %arg1: memref<16x2xf32, #tpu.memory_space<vmem>>, %arg2: memref<2x2xf32, #tpu.memory_space<vmem>>, %arg3: memref<1x2xf32, #tpu.memory_space<vmem>>, %arg4: memref<16x2xf32, #tpu.memory_space<vmem>>) attributes {dimension_semantics = [#tpu.dimension_semantics<arbitrary>], iteration_bounds = array<i64: 1>, scalar_prefetch = 0 : i64, scratch_operands = 0 : i64, tpu.core_type = #tpu.core_type<tc>, window_params = [{pipeline_mode = #tpu.pipeline_mode<synchronous>, transform_indices = @transform_0, window_bounds = array<i64: 16, 2>}, {pipeline_mode = #tpu.pipeline_mode<synchronous>, transform_indices = @transform_1, window_bounds = array<i64: 2, 2>}, {pipeline_mode = #tpu.pipeline_mode<synchronous>, transform_indices = @transform_2, window_bounds = array<i64: 1, 2>}, {pipeline_mode = #tpu.pipeline_mode<synchronous>, transform_indices = @transform_3, window_bounds = array<i64: 16, 2>}]} {
    %c0 = arith.constant 0 : index
    %c0_0 = arith.constant 0 : index
    %0 = vector.load %arg1[%c0, %c0_0] : memref<16x2xf32, #tpu.memory_space<vmem>>, vector<16x2xf32>
    %c0_1 = arith.constant 0 : index
    %c0_2 = arith.constant 0 : index
    %1 = vector.load %arg2[%c0_1, %c0_2] : memref<2x2xf32, #tpu.memory_space<vmem>>, vector<2x2xf32>
    %2 = vector.extract_strided_slice %0 {offsets = [0, 0], sizes = [16, 1], strides = [1, 1]} : vector<16x2xf32> to vector<16x1xf32>
    %3 = vector.extract_strided_slice %1 {offsets = [0, 0], sizes = [1, 2], strides = [1, 1]} : vector<2x2xf32> to vector<1x2xf32>
    %4 = vector.broadcast %2 : vector<16x1xf32> to vector<16x2xf32>
    %5 = vector.broadcast %3 : vector<1x2xf32> to vector<16x2xf32>
    %6 = arith.mulf %4, %5 : vector<16x2xf32>
    %7 = vector.extract_strided_slice %0 {offsets = [0, 1], sizes = [16, 1], strides = [1, 1]} : vector<16x2xf32> to vector<16x1xf32>
    %8 = vector.extract_strided_slice %1 {offsets = [1, 0], sizes = [1, 2], strides = [1, 1]} : vector<2x2xf32> to vector<1x2xf32>
    %9 = vector.broadcast %7 : vector<16x1xf32> to vector<16x2xf32>
    %10 = vector.broadcast %8 : vector<1x2xf32> to vector<16x2xf32>
    %11 = arith.mulf %9, %10 : vector<16x2xf32>
    %12 = arith.addf %6, %11 : vector<16x2xf32>
    %c0_3 = arith.constant 0 : index
    %c0_4 = arith.constant 0 : index
    %13 = vector.load %arg3[%c0_3, %c0_4] : memref<1x2xf32, #tpu.memory_space<vmem>>, vector<1x2xf32>
    %14 = vector.broadcast %13 : vector<1x2xf32> to vector<16x2xf32>
    %15 = arith.addf %12, %14 : vector<16x2xf32>
    %c0_5 = arith.constant 0 : index
    %c0_6 = arith.constant 0 : index
    %16 = vector.load %arg4[%c0_5, %c0_6] : memref<16x2xf32, #tpu.memory_space<vmem>>, vector<16x2xf32>
    tpu.vector_store %arg4[%c0_5, %c0_6], %15 {strides = array<i32>} : memref<16x2xf32, #tpu.memory_space<vmem>>, vector<16x2xf32>,
    return
  }
  func.func @transform_0(%arg0: i32) -> (i32, i32) {
    %c0_i32 = arith.constant 0 : i32
    %c0_i32_0 = arith.constant 0 : i32
    %c0_i32_1 = arith.constant 0 : i32
    return %c0_i32, %c0_i32_0 : i32, i32
  }
  func.func @transform_1(%arg0: i32) -> (i32, i32) {
    %c0_i32 = arith.constant 0 : i32
    %c0_i32_0 = arith.constant 0 : i32
    %c0_i32_1 = arith.constant 0 : i32
    return %c0_i32, %c0_i32_0 : i32, i32
  }
  func.func @transform_2(%arg0: i32) -> (i32, i32) {
    %c0_i32 = arith.constant 0 : i32
    %c0_i32_0 = arith.constant 0 : i32
    %c0_i32_1 = arith.constant 0 : i32
    return %c0_i32, %c0_i32_0 : i32, i32
  }
  func.func @transform_3(%arg0: i32) -> (i32, i32) {
    %c0_i32 = arith.constant 0 : i32
    %c0_i32_0 = arith.constant 0 : i32
    %c0_i32_1 = arith.constant 0 : i32
    return %c0_i32, %c0_i32_0 : i32, i32
  }
}

</mosaic_0001>

<bundles_post_ra>
// kernel: _forward_impl.1
= control target key start
LH: loop header
LB: loop body
LE: loop exit
PB: predicated region body
PF: predicated region fallthrough
CT: control target
= control target key end

     0   :  { %v71_v0 = vmov 1   ;;  %v72_v1 = vmov 0   ;;  %v27_v4 = vlaneseq  ;;  %vm58_vm0 = vcmask 15360   ;;  %s111_s0 = inlined_call_operand.vmem [shape: f32[16,2], index: 0, kind: input, shape index: {}]   ;;  %s112_s1 = inlined_call_operand.vmem [shape: f32[2,2], index: 1, kind: input, shape index: {}]   ;;  %s113_s2 = inlined_call_operand.vmem [shape: f32[1,2], index: 2, kind: input, shape index: {}]   ;;  %s114_s3 = inlined_call_operand.vmem [shape: f32[16,2], index: 3, kind: output, shape index: {}]  }
   0x1   :  { %69 = vset.pattern.permute.xlu1 %v71_v0  ;;  %68 = vset.pattern.permute.xlu0 %v72_v1  ;;  %v14_v2 = vld [vmem:[%s111_s0] sm:$0xff]  ;;  %v15_v3 = vld [vmem:[%s111_s0 + $0x8] sm:$0xff] }
   0x2   :  { %34 = vperm.xlu1 %69, %v14_v2   ;;  %19 = vperm.xlu0 %68, %v14_v2   ;;  %v28_v5 = vshrl.u32 %v27_v4, 7  ;;  %v16_v8 = vld [vmem:[%s112_s1] sm:$0x3] }
   0x3   :  { %v65_v15 = vld [vmem:[%s113_s2] ss:$0 sm:$0xff] }
   0x4   :  { %v43_v6 = vsub.s32 1, %v28_v5  ;;  %v29_v7 = vsub.s32 0, %v28_v5 }
   0x6   :  { %38 = vperm.xlu1 %69, %v15_v3   ;;  %24 = vperm.xlu0 %68, %v15_v3   ;;  %v44_v9 = vrot.slane %v16_v8, %v43_v6  ;;  %v30_v10 = vrot.slane %v16_v8, %v29_v7 }
   0xa   :  { %70 = vset.pattern.permute.xlu0 %v71_v0 }
  0x81   :  { %v35_v11 = vpop.permute.xlu1 %34  ;;  %v20_v12 = vpop.permute.xlu0 %19 }
  0x82   :  { %v45_v13 = vmul.f32 %v44_v9, %v35_v11  ;;  %v31_v14 = vmul.f32 %v30_v10, %v20_v12 }
  0x84   :  { %v47_v16 = vadd.f32 %v45_v13, %v31_v14 }
  0x85   :  { %v39_v17 = vpop.permute.xlu1 %38  ;;  %v25_v18 = vpop.permute.xlu0 %24 }
  0x86   :  { %v56_v19 = vadd.f32 %v65_v15, %v47_v16  ;;  %v46_v20 = vmul.f32 %v44_v9, %v39_v17  ;;  %v32_v21 = vmul.f32 %v30_v10, %v25_v18 }
  0x88   :  { %59 = vst.msk [vmem:[%s114_s3] sm:$0xff] %vm58_vm0, %v56_v19  ;;  %v48_v22 = vadd.f32 %v46_v20, %v32_v21 }
  0x8a   :  { %v57_v23 = vadd.f32 %v65_v15, %v48_v22 }
  0x8c   :  { %60 = vst.msk [vmem:[%s114_s3 + $0x8] sm:$0xff] %vm58_vm0, %v57_v23 }

</bundles_post_ra>
